<compile_context>
chip_gen: v6e
topology: v6e:2x2x1
jax: 0.10.0
libtpu: 0.0.40
codegen_flags: <defaults>
</compile_context>

<pallas_src>
import math

import jax
import jax.numpy as jnp
from jax import lax
from jax.experimental import pallas as pl
from jax.experimental.pallas import tpu as pltpu


def _make_block_kernel(N, C, CE, H, Wp, Lpad_img):
    L = H * Wp                                     # per-image output-domain length
    offsets = [kh * Wp + kw for kh in range(3) for kw in range(3)]

    def kernel(xpf_ref, w3_ref, b1_ref, w2_ref, b2_ref, out_ref, xcat_ref):
        # xpf_ref : (N, C, Lpad_img)  zero-padded input, spatially flattened
        # w3_ref  : (CE, 9*C)         fused 3x3 weights
        # b1_ref  : (CE, 1)
        # w2_ref  : (C, CE)           1x1 weights
        # b2_ref  : (C, 1)
        # out_ref : (N, C, L)         width-padded output domain (junk cols cropped in wrapper)
        # xcat_ref: (9*C, N*L)        VMEM scratch: fused im2col tile, batch folded on lanes

        # Build the (9*C, N*L) im2col tile: tap (kh,kw) of image n is a
        # lane-shifted window of that image's padded, flattened plane.
        for n in range(N):
            xp_n = xpf_ref[n]                                      # (C, Lpad_img)
            for k, off in enumerate(offsets):
                xcat_ref[k * C:(k + 1) * C, n * L:(n + 1) * L] = xp_n[:, off:off + L]

        # conv3x3 as ONE matmul: K = 9*C, lane-dense N-extent = N*L (multiple of 128)
        h = jnp.dot(w3_ref[...], xcat_ref[...],
                    preferred_element_type=jnp.float32)            # (CE, N*L)
        h = jnp.maximum(h + b1_ref[...], 0.0)                      # bias + ReLU

        # conv1x1 as a single matmul
        y = jnp.dot(w2_ref[...], h,
                    preferred_element_type=jnp.float32)            # (C, N*L)
        y = jnp.maximum(y + b2_ref[...], 0.0)                      # bias + ReLU

        # residual add: center tap (kh=1,kw=1) of the im2col tile == x on the
        # output domain (junk columns hold pad zeros and are cropped later).
        y = y + xcat_ref[4 * C:5 * C, :]

        for n in range(N):
            out_ref[n] = y[:, n * L:(n + 1) * L].astype(out_ref.dtype)

    return kernel


def block_forward(x, w1, b1, w2, b2):
    """Pallas implementation of Block.forward (NCHW).
    x: (N, C, H, W) f32; w1: (CE, C, 3, 3); b1: (CE,); w2: (C, CE, 1, 1); b2: (C,)."""
    N, C, H, W = x.shape
    CE = w1.shape[0]

    # Width padding: at least W+2 (conv halo); round up so L = H*Wp is a
    # multiple of 128 (lane-dense vregs) when the extra junk columns are cheap.
    Wp = W + 2
    if (H * Wp) % 128 != 0:
        step = 128 // math.gcd(H, 128)
        cand = ((Wp + step - 1) // step) * step
        if cand <= 2 * Wp:
            Wp = cand
    L = H * Wp                       # per-image output-domain length (valid cols 0..W-1)
    Lpad_img = (H + 3) * Wp          # flat padded length per image (top=1, bottom=2 rows)

    # ---- glue: ONE pad + free reshape (no residual copy, no extra flat pad) ----
    xp = jnp.pad(x, ((0, 0), (0, 0), (1, 2), (1, Wp - 1 - W)))     # (N, C, H+3, Wp)
    xpf = xp.reshape(N, C, Lpad_img)                               # (N, C, Lpad_img)

    # weights: w3cat[co, (kh*3+kw)*C + ci] = w1[co, ci, kh, kw]
    w3cat = jnp.transpose(w1, (0, 2, 3, 1)).reshape(CE, 9 * C)     # (CE, 9*C)
    b1c = b1.reshape(CE, 1)
    w2m = w2[:, :, 0, 0]                                           # (C, CE)
    b2c = b2.reshape(C, 1)

    kernel = _make_block_kernel(N, C, CE, H, Wp, Lpad_img)

    flops = 2 * N * L * (9 * C * CE + CE * C)
    bytes_accessed = 4 * (xpf.size + N * C * L + w3cat.size + w2m.size + CE + C)

    out = pl.pallas_call(
        kernel,
        out_shape=jax.ShapeDtypeStruct((N, C, L), x.dtype),
        grid_spec=pltpu.PrefetchScalarGridSpec(
            num_scalar_prefetch=0,
            grid=(1,),                               # single step: batch folded on lanes
            in_specs=[
                pl.BlockSpec((N, C, Lpad_img), lambda i: (0, 0, 0)),
                pl.BlockSpec((CE, 9 * C), lambda i: (0, 0)),
                pl.BlockSpec((CE, 1), lambda i: (0, 0)),
                pl.BlockSpec((C, CE), lambda i: (0, 0)),
                pl.BlockSpec((C, 1), lambda i: (0, 0)),
            ],
            out_specs=pl.BlockSpec((N, C, L), lambda i: (0, 0, 0)),
            scratch_shapes=[pltpu.VMEM((9 * C, N * L), jnp.float32)],
        ),
        compiler_params=pltpu.CompilerParams(
            dimension_semantics=("arbitrary",)),
        cost_estimate=pl.CostEstimate(flops=flops, transcendentals=0,
                                      bytes_accessed=bytes_accessed),
    )(xpf, w3cat, b1c, w2m, b2c)

    # drop the junk columns of the width-padded output domain; already NCHW
    return out.reshape(N, C, H, Wp)[:, :, :, :W]


def block_reference(x, w1, b1, w2, b2):
    """Pure-JAX reference matching the PyTorch module (NCHW)."""
    dn = ("NCHW", "OIHW", "NCHW")
    h = lax.conv_general_dilated(x, w1, (1, 1), ((1, 1), (1, 1)),
                                 dimension_numbers=dn)
    h = jnp.maximum(h + b1[None, :, None, None], 0.0)
    y = lax.conv_general_dilated(h, w2, (1, 1), ((0, 0), (0, 0)),
                                 dimension_numbers=dn)
    y = jnp.maximum(y + b2[None, :, None, None], 0.0)
    return x + y


if __name__ == "__main__":
    # Block(channels=4, expand=2), input (2, 4, 16, 16)
    N, C, H, W = 2, 4, 16, 16
    expand = 2
    CE = C * expand

    key = jax.random.PRNGKey(0)
    kx, k1, kb1, k2, kb2 = jax.random.split(key, 5)
    x = jax.random.normal(kx, (N, C, H, W), dtype=jnp.float32)
    w1 = jax.random.normal(k1, (CE, C, 3, 3), dtype=jnp.float32) * 0.1
    b1 = jax.random.normal(kb1, (CE,), dtype=jnp.float32) * 0.1
    w2 = jax.random.normal(k2, (C, CE, 1, 1), dtype=jnp.float32) * 0.1
    b2 = jax.random.normal(kb2, (C,), dtype=jnp.float32) * 0.1

    out = jax.jit(block_forward)(x, w1, b1, w2, b2)
    out = jax.block_until_ready(out)

    ref = block_reference(x, w1, b1, w2, b2)
    assert out.shape == (N, C, H, W), out.shape
    assert jnp.allclose(out, ref, atol=1e-4, rtol=1e-4), (
        f"max abs err = {jnp.max(jnp.abs(out - ref))}")

    print("KERNEL_OK")
</pallas_src>

<mosaic_0001>
module attributes {stable_mosaic.version = 11 : i64} {
  func.func @kernel(%arg0: i32, %arg1: memref<2x4x456xf32, #tpu.memory_space<vmem>>, %arg2: memref<8x36xf32, #tpu.memory_space<vmem>>, %arg3: memref<8x1xf32, #tpu.memory_space<vmem>>, %arg4: memref<4x8xf32, #tpu.memory_space<vmem>>, %arg5: memref<4x1xf32, #tpu.memory_space<vmem>>, %arg6: memref<2x4x384xf32, #tpu.memory_space<vmem>>, %arg7: memref<36x768xf32, #tpu.memory_space<vmem>>) attributes {dimension_semantics = [#tpu.dimension_semantics<arbitrary>], iteration_bounds = array<i64: 1>, scalar_prefetch = 0 : i64, scratch_operands = 1 : i64, tpu.core_type = #tpu.core_type<tc>, window_params = [{pipeline_mode = #tpu.pipeline_mode<synchronous>, transform_indices = @transform_0, window_bounds = array<i64: 2, 4, 456>}, {pipeline_mode = #tpu.pipeline_mode<synchronous>, transform_indices = @transform_1, window_bounds = array<i64: 8, 36>}, {pipeline_mode = #tpu.pipeline_mode<synchronous>, transform_indices = @transform_2, window_bounds = array<i64: 8, 1>}, {pipeline_mode = #tpu.pipeline_mode<synchronous>, transform_indices = @transform_3, window_bounds = array<i64: 4, 8>}, {pipeline_mode = #tpu.pipeline_mode<synchronous>, transform_indices = @transform_4, window_bounds = array<i64: 4, 1>}, {pipeline_mode = #tpu.pipeline_mode<synchronous>, transform_indices = @transform_5, window_bounds = array<i64: 2, 4, 384>}]} {
    %c0 = arith.constant 0 : index
    %c0_0 = arith.constant 0 : index
    %c0_1 = arith.constant 0 : index
    %0 = vector.load %arg1[%c0, %c0_0, %c0_1] : memref<2x4x456xf32, #tpu.memory_space<vmem>>, vector<1x4x456xf32>
    %1 = vector.shape_cast %0 : vector<1x4x456xf32> to vector<4x456xf32>
    %2 = vector.extract_strided_slice %1 {offsets = [0, 0], sizes = [4, 384], strides = [1, 1]} : vector<4x456xf32> to vector<4x384xf32>
    %c0_2 = arith.constant 0 : index
    %c0_3 = arith.constant 0 : index
    %3 = vector.load %arg7[%c0_2, %c0_3] : memref<36x768xf32, #tpu.memory_space<vmem>>, vector<4x384xf32>
    tpu.vector_store %arg7[%c0_2, %c0_3], %2 {strides = array<i32>} : memref<36x768xf32, #tpu.memory_space<vmem>>, vector<4x384xf32>,
    %4 = vector.extract_strided_slice %1 {offsets = [0, 1], sizes = [4, 384], strides = [1, 1]} : vector<4x456xf32> to vector<4x384xf32>
    %c4 = arith.constant 4 : index
    %c0_4 = arith.constant 0 : index
    %5 = vector.load %arg7[%c4, %c0_4] : memref<36x768xf32, #tpu.memory_space<vmem>>, vector<4x384xf32>
    tpu.vector_store %arg7[%c4, %c0_4], %4 {strides = array<i32>} : memref<36x768xf32, #tpu.memory_space<vmem>>, vector<4x384xf32>,
    %6 = vector.extract_strided_slice %1 {offsets = [0, 2], sizes = [4, 384], strides = [1, 1]} : vector<4x456xf32> to vector<4x384xf32>
    %c8 = arith.constant 8 : index
    %c0_5 = arith.constant 0 : index
    %7 = vector.load %arg7[%c8, %c0_5] : memref<36x768xf32, #tpu.memory_space<vmem>>, vector<4x384xf32>
    tpu.vector_store %arg7[%c8, %c0_5], %6 {strides = array<i32>} : memref<36x768xf32, #tpu.memory_space<vmem>>, vector<4x384xf32>,
    %8 = vector.extract_strided_slice %1 {offsets = [0, 24], sizes = [4, 384], strides = [1, 1]} : vector<4x456xf32> to vector<4x384xf32>
    %c12 = arith.constant 12 : index
    %c0_6 = arith.constant 0 : index
    %9 = vector.load %arg7[%c12, %c0_6] : memref<36x768xf32, #tpu.memory_space<vmem>>, vector<4x384xf32>
    tpu.vector_store %arg7[%c12, %c0_6], %8 {strides = array<i32>} : memref<36x768xf32, #tpu.memory_space<vmem>>, vector<4x384xf32>,
    %10 = vector.extract_strided_slice %1 {offsets = [0, 25], sizes = [4, 384], strides = [1, 1]} : vector<4x456xf32> to vector<4x384xf32>
    %c16 = arith.constant 16 : index
    %c0_7 = arith.constant 0 : index
    %11 = vector.load %arg7[%c16, %c0_7] : memref<36x768xf32, #tpu.memory_space<vmem>>, vector<4x384xf32>
    tpu.vector_store %arg7[%c16, %c0_7], %10 {strides = array<i32>} : memref<36x768xf32, #tpu.memory_space<vmem>>, vector<4x384xf32>,
    %12 = vector.extract_strided_slice %1 {offsets = [0, 26], sizes = [4, 384], strides = [1, 1]} : vector<4x456xf32> to vector<4x384xf32>
    %c20 = arith.constant 20 : index
    %c0_8 = arith.constant 0 : index
    %13 = vector.load %arg7[%c20, %c0_8] : memref<36x768xf32, #tpu.memory_space<vmem>>, vector<4x384xf32>
    tpu.vector_store %arg7[%c20, %c0_8], %12 {strides = array<i32>} : memref<36x768xf32, #tpu.memory_space<vmem>>, vector<4x384xf32>,
    %14 = vector.extract_strided_slice %1 {offsets = [0, 48], sizes = [4, 384], strides = [1, 1]} : vector<4x456xf32> to vector<4x384xf32>
    %c24 = arith.constant 24 : index
    %c0_9 = arith.constant 0 : index
    %15 = vector.load %arg7[%c24, %c0_9] : memref<36x768xf32, #tpu.memory_space<vmem>>, vector<4x384xf32>
    tpu.vector_store %arg7[%c24, %c0_9], %14 {strides = array<i32>} : memref<36x768xf32, #tpu.memory_space<vmem>>, vector<4x384xf32>,
    %16 = vector.extract_strided_slice %1 {offsets = [0, 49], sizes = [4, 384], strides = [1, 1]} : vector<4x456xf32> to vector<4x384xf32>
    %c28 = arith.constant 28 : index
    %c0_10 = arith.constant 0 : index
    %17 = vector.load %arg7[%c28, %c0_10] : memref<36x768xf32, #tpu.memory_space<vmem>>, vector<4x384xf32>
    tpu.vector_store %arg7[%c28, %c0_10], %16 {strides = array<i32>} : memref<36x768xf32, #tpu.memory_space<vmem>>, vector<4x384xf32>,
    %18 = vector.extract_strided_slice %1 {offsets = [0, 50], sizes = [4, 384], strides = [1, 1]} : vector<4x456xf32> to vector<4x384xf32>
    %c32 = arith.constant 32 : index
    %c0_11 = arith.constant 0 : index
    %19 = vector.load %arg7[%c32, %c0_11] : memref<36x768xf32, #tpu.memory_space<vmem>>, vector<4x384xf32>
    tpu.vector_store %arg7[%c32, %c0_11], %18 {strides = array<i32>} : memref<36x768xf32, #tpu.memory_space<vmem>>, vector<4x384xf32>,
    %c1 = arith.constant 1 : index
    %c0_12 = arith.constant 0 : index
    %c0_13 = arith.constant 0 : index
    %20 = vector.load %arg1[%c1, %c0_12, %c0_13] : memref<2x4x456xf32, #tpu.memory_space<vmem>>, vector<1x4x456xf32>
    %21 = vector.shape_cast %20 : vector<1x4x456xf32> to vector<4x456xf32>
    %22 = vector.extract_strided_slice %21 {offsets = [0, 0], sizes = [4, 384], strides = [1, 1]} : vector<4x456xf32> to vector<4x384xf32>
    %c0_14 = arith.constant 0 : index
    %c384 = arith.constant 384 : index
    %23 = vector.load %arg7[%c0_14, %c384] : memref<36x768xf32, #tpu.memory_space<vmem>>, vector<4x384xf32>
    tpu.vector_store %arg7[%c0_14, %c384], %22 {strides = array<i32>} : memref<36x768xf32, #tpu.memory_space<vmem>>, vector<4x384xf32>,
    %24 = vector.extract_strided_slice %21 {offsets = [0, 1], sizes = [4, 384], strides = [1, 1]} : vector<4x456xf32> to vector<4x384xf32>
    %c4_15 = arith.constant 4 : index
    %c384_16 = arith.constant 384 : index
    %25 = vector.load %arg7[%c4_15, %c384_16] : memref<36x768xf32, #tpu.memory_space<vmem>>, vector<4x384xf32>
    tpu.vector_store %arg7[%c4_15, %c384_16], %24 {strides = array<i32>} : memref<36x768xf32, #tpu.memory_space<vmem>>, vector<4x384xf32>,
    %26 = vector.extract_strided_slice %21 {offsets = [0, 2], sizes = [4, 384], strides = [1, 1]} : vector<4x456xf32> to vector<4x384xf32>
    %c8_17 = arith.constant 8 : index
    %c384_18 = arith.constant 384 : index
    %27 = vector.load %arg7[%c8_17, %c384_18] : memref<36x768xf32, #tpu.memory_space<vmem>>, vector<4x384xf32>
    tpu.vector_store %arg7[%c8_17, %c384_18], %26 {strides = array<i32>} : memref<36x768xf32, #tpu.memory_space<vmem>>, vector<4x384xf32>,
    %28 = vector.extract_strided_slice %21 {offsets = [0, 24], sizes = [4, 384], strides = [1, 1]} : vector<4x456xf32> to vector<4x384xf32>
    %c12_19 = arith.constant 12 : index
    %c384_20 = arith.constant 384 : index
    %29 = vector.load %arg7[%c12_19, %c384_20] : memref<36x768xf32, #tpu.memory_space<vmem>>, vector<4x384xf32>
    tpu.vector_store %arg7[%c12_19, %c384_20], %28 {strides = array<i32>} : memref<36x768xf32, #tpu.memory_space<vmem>>, vector<4x384xf32>,
    %30 = vector.extract_strided_slice %21 {offsets = [0, 25], sizes = [4, 384], strides = [1, 1]} : vector<4x456xf32> to vector<4x384xf32>
    %c16_21 = arith.constant 16 : index
    %c384_22 = arith.constant 384 : index
    %31 = vector.load %arg7[%c16_21, %c384_22] : memref<36x768xf32, #tpu.memory_space<vmem>>, vector<4x384xf32>
    tpu.vector_store %arg7[%c16_21, %c384_22], %30 {strides = array<i32>} : memref<36x768xf32, #tpu.memory_space<vmem>>, vector<4x384xf32>,
    %32 = vector.extract_strided_slice %21 {offsets = [0, 26], sizes = [4, 384], strides = [1, 1]} : vector<4x456xf32> to vector<4x384xf32>
    %c20_23 = arith.constant 20 : index
    %c384_24 = arith.constant 384 : index
    %33 = vector.load %arg7[%c20_23, %c384_24] : memref<36x768xf32, #tpu.memory_space<vmem>>, vector<4x384xf32>
    tpu.vector_store %arg7[%c20_23, %c384_24], %32 {strides = array<i32>} : memref<36x768xf32, #tpu.memory_space<vmem>>, vector<4x384xf32>,
    %34 = vector.extract_strided_slice %21 {offsets = [0, 48], sizes = [4, 384], strides = [1, 1]} : vector<4x456xf32> to vector<4x384xf32>
    %c24_25 = arith.constant 24 : index
    %c384_26 = arith.constant 384 : index
    %35 = vector.load %arg7[%c24_25, %c384_26] : memref<36x768xf32, #tpu.memory_space<vmem>>, vector<4x384xf32>
    tpu.vector_store %arg7[%c24_25, %c384_26], %34 {strides = array<i32>} : memref<36x768xf32, #tpu.memory_space<vmem>>, vector<4x384xf32>,
    %36 = vector.extract_strided_slice %21 {offsets = [0, 49], sizes = [4, 384], strides = [1, 1]} : vector<4x456xf32> to vector<4x384xf32>
    %c28_27 = arith.constant 28 : index
    %c384_28 = arith.constant 384 : index
    %37 = vector.load %arg7[%c28_27, %c384_28] : memref<36x768xf32, #tpu.memory_space<vmem>>, vector<4x384xf32>
    tpu.vector_store %arg7[%c28_27, %c384_28], %36 {strides = array<i32>} : memref<36x768xf32, #tpu.memory_space<vmem>>, vector<4x384xf32>,
    %38 = vector.extract_strided_slice %21 {offsets = [0, 50], sizes = [4, 384], strides = [1, 1]} : vector<4x456xf32> to vector<4x384xf32>
    %c32_29 = arith.constant 32 : index
    %c384_30 = arith.constant 384 : index
    %39 = vector.load %arg7[%c32_29, %c384_30] : memref<36x768xf32, #tpu.memory_space<vmem>>, vector<4x384xf32>
    tpu.vector_store %arg7[%c32_29, %c384_30], %38 {strides = array<i32>} : memref<36x768xf32, #tpu.memory_space<vmem>>, vector<4x384xf32>,
    %c0_31 = arith.constant 0 : index
    %c0_32 = arith.constant 0 : index
    %40 = vector.load %arg2[%c0_31, %c0_32] : memref<8x36xf32, #tpu.memory_space<vmem>>, vector<8x36xf32>
    %c0_33 = arith.constant 0 : index
    %c0_34 = arith.constant 0 : index
    %41 = vector.load %arg7[%c0_33, %c0_34] : memref<36x768xf32, #tpu.memory_space<vmem>>, vector<36x768xf32>
    %cst = arith.constant dense<0.000000e+00> : vector<8x768xf32>
    %42 = tpu.matmul %40, %41, %cst {dimension_numbers = #tpu.dot_dimension_numbers<[1], [0], [0], [1], [0, 0, 1, 1], [], []>} : vector<8x36xf32>, vector<36x768xf32>, vector<8x768xf32> -> vector<8x768xf32>
    %c0_35 = arith.constant 0 : index
    %c0_36 = arith.constant 0 : index
    %43 = vector.load %arg3[%c0_35, %c0_36] : memref<8x1xf32, #tpu.memory_space<vmem>>, vector<8x1xf32>
    %44 = vector.broadcast %43 : vector<8x1xf32> to vector<8x768xf32>
    %45 = arith.addf %42, %44 : vector<8x768xf32>
    %cst_37 = arith.constant 0.000000e+00 : f32
    %46 = vector.broadcast %cst_37 : f32 to vector<8x768xf32>
    %47 = arith.maximumf %45, %46 : vector<8x768xf32>
    %c0_38 = arith.constant 0 : index
    %c0_39 = arith.constant 0 : index
    %48 = vector.load %arg4[%c0_38, %c0_39] : memref<4x8xf32, #tpu.memory_space<vmem>>, vector<4x8xf32>
    %cst_40 = arith.constant dense<0.000000e+00> : vector<4x768xf32>
    %49 = tpu.matmul %48, %47, %cst_40 {dimension_numbers = #tpu.dot_dimension_numbers<[1], [0], [0], [1], [0, 0, 1, 1], [], []>} : vector<4x8xf32>, vector<8x768xf32>, vector<4x768xf32> -> vector<4x768xf32>
    %c0_41 = arith.constant 0 : index
    %c0_42 = arith.constant 0 : index
    %50 = vector.load %arg5[%c0_41, %c0_42] : memref<4x1xf32, #tpu.memory_space<vmem>>, vector<4x1xf32>
    %51 = vector.broadcast %50 : vector<4x1xf32> to vector<4x768xf32>
    %52 = arith.addf %49, %51 : vector<4x768xf32>
    %cst_43 = arith.constant 0.000000e+00 : f32
    %53 = vector.broadcast %cst_43 : f32 to vector<4x768xf32>
    %54 = arith.maximumf %52, %53 : vector<4x768xf32>
    %c16_44 = arith.constant 16 : index
    %c0_45 = arith.constant 0 : index
    %55 = vector.load %arg7[%c16_44, %c0_45] : memref<36x768xf32, #tpu.memory_space<vmem>>, vector<4x768xf32>
    %56 = arith.addf %54, %55 : vector<4x768xf32>
    %57 = vector.extract_strided_slice %56 {offsets = [0, 0], sizes = [4, 384], strides = [1, 1]} : vector<4x768xf32> to vector<4x384xf32>
    %c0_46 = arith.constant 0 : index
    %c0_47 = arith.constant 0 : index
    %c0_48 = arith.constant 0 : index
    %58 = vector.load %arg6[%c0_46, %c0_47, %c0_48] : memref<2x4x384xf32, #tpu.memory_space<vmem>>, vector<1x4x384xf32>
    %59 = vector.shape_cast %58 : vector<1x4x384xf32> to vector<4x384xf32>
    %60 = vector.shape_cast %57 : vector<4x384xf32> to vector<1x4x384xf32>
    tpu.vector_store %arg6[%c0_46, %c0_47, %c0_48], %60 {strides = array<i32>} : memref<2x4x384xf32, #tpu.memory_space<vmem>>, vector<1x4x384xf32>,
    %61 = vector.extract_strided_slice %56 {offsets = [0, 384], sizes = [4, 384], strides = [1, 1]} : vector<4x768xf32> to vector<4x384xf32>
    %c1_49 = arith.constant 1 : index
    %c0_50 = arith.constant 0 : index
    %c0_51 = arith.constant 0 : index
    %62 = vector.load %arg6[%c1_49, %c0_50, %c0_51] : memref<2x4x384xf32, #tpu.memory_space<vmem>>, vector<1x4x384xf32>
    %63 = vector.shape_cast %62 : vector<1x4x384xf32> to vector<4x384xf32>
    %64 = vector.shape_cast %61 : vector<4x384xf32> to vector<1x4x384xf32>
    tpu.vector_store %arg6[%c1_49, %c0_50, %c0_51], %64 {strides = array<i32>} : memref<2x4x384xf32, #tpu.memory_space<vmem>>, vector<1x4x384xf32>,
    return
  }
  func.func @transform_0(%arg0: i32) -> (i32, i32, i32) {
    %c0_i32 = arith.constant 0 : i32
    %c0_i32_0 = arith.constant 0 : i32
    %c0_i32_1 = arith.constant 0 : i32
    %c0_i32_2 = arith.constant 0 : i32
    return %c0_i32, %c0_i32_0, %c0_i32_1 : i32, i32, i32
  }
  func.func @transform_1(%arg0: i32) -> (i32, i32) {
    %c0_i32 = arith.constant 0 : i32
    %c0_i32_0 = arith.constant 0 : i32
    %c0_i32_1 = arith.constant 0 : i32
    return %c0_i32, %c0_i32_0 : i32, i32
  }
  func.func @transform_2(%arg0: i32) -> (i32, i32) {
    %c0_i32 = arith.constant 0 : i32
    %c0_i32_0 = arith.constant 0 : i32
    %c0_i32_1 = arith.constant 0 : i32
    return %c0_i32, %c0_i32_0 : i32, i32
  }
  func.func @transform_3(%arg0: i32) -> (i32, i32) {
    %c0_i32 = arith.constant 0 : i32
    %c0_i32_0 = arith.constant 0 : i32
    %c0_i32_1 = arith.constant 0 : i32
    return %c0_i32, %c0_i32_0 : i32, i32
  }
  func.func @transform_4(%arg0: i32) -> (i32, i32) {
    %c0_i32 = arith.constant 0 : i32
    %c0_i32_0 = arith.constant 0 : i32
    %c0_i32_1 = arith.constant 0 : i32
    return %c0_i32, %c0_i32_0 : i32, i32
  }
  func.func @transform_5(%arg0: i32) -> (i32, i32, i32) {
    %c0_i32 = arith.constant 0 : i32
    %c0_i32_0 = arith.constant 0 : i32
    %c0_i32_1 = arith.constant 0 : i32
    %c0_i32_2 = arith.constant 0 : i32
    return %c0_i32, %c0_i32_0, %c0_i32_1 : i32, i32, i32
  }
}

</mosaic_0001>

<bundles_post_ra>
// kernel: block_forward.1
= control target key start
LH: loop header
LB: loop body
LE: loop exit
PB: predicated region body
PF: predicated region fallthrough
CT: control target
= control target key end

     0   :  { %s899_s24 = smov 78   ;;  %s900_s27 = smov 80   ;;  %v907_v10 = vmov 0.0   ;;  %vm166_vm0 = vcmask 637952   ;;  %vm130_vm1 = vcmask 654336   ;;  %v908_v22 = vmov 0   ;;  %s1203_s0 = inlined_call_operand.vmem [shape: f32[2,4,456], index: 0, kind: input, shape index: {}]   ;;  %s1204_s2 = inlined_call_operand.vmem [shape: f32[8,1], index: 2, kind: input, shape index: {}]   ;;  %s1205_s1 = inlined_call_operand.vmem [shape: f32[8,36], index: 1, kind: input, shape index: {}]   ;;  %s1206_s4 = inlined_call_operand.vmem [shape: f32[4,1], index: 4, kind: input, shape index: {}]   ;;  %s1207_s3 = inlined_call_operand.vmem [shape: f32[4,8], index: 3, kind: input, shape index: {}]   ;;  %s1208_s5 = inlined_call_operand.vmem [shape: f32[2,4,384], index: 5, kind: output, shape index: {}]  }
   0x1   :  { %v942_v0 = vld [vmem:[%s1203_s0 + $0x8] sm:$0xff]  ;;  %v20_v1 = vld [vmem:[%s1203_s0] sm:$0xff]  ;;  %v950_v2 = vld [vmem:[%s1203_s0 + $0x10] sm:$0xff]  ;;  %s901_s28 = smov 79   ;;  %s903_s29 = smov 102   ;;  %449 = vmatprep.mubr.f32.mxu0 %v907_v10  ;;  %520 = vmatprep.mubr.f32.mxu1 %v907_v10  ;;  %vm148_vm2 = vcmask 646144  }
   0x2   :  { %162 = vrot.lane.b32.xlu0 %v942_v0, %s899_s24  ;;  %28 = vst [vmem:[#allocation2 + $0xd8] sm:$0xf] %v942_v0  ;;  %158 = vrot.lane.b32.xlu1 %v20_v1, %s899_s24  ;;  %26 = vst [vmem:[#allocation2 + $0x80] sm:$0xf] %v20_v1  ;;  %v24_v3 = vcombine.high %v20_v1, %v20_v1  ;;  %v960_v4 = vld [vmem:[%s1203_s0 + $0x18] sm:$0xff]  ;;  %v181_v5 = vcombine.high %v950_v2, %v950_v2  ;;  %s902_s0 = smov 103  }
   0x3   :  { %183 = vst [vmem:[#allocation2 + $0x70] sm:$0xf] %v950_v2  ;;  %185 = vst [vmem:[#allocation2 + $0x18] sm:$0xf] %v960_v4  ;;  %v30_v6 = vcombine.low %v942_v0, %v942_v0  ;;  %v29_v7 = vcombine.low %v20_v1, %v20_v1  ;;  %s904_s30 = smov 126   ;;  %s905_s6 = smov 104   ;;  %v49_v8 = vcombine.high %v942_v0, %v942_v0  ;;  %889 = vset.pattern.permute.xlu0 %v908_v22 }
   0x4   :  { %27 = vst [vmem:[#allocation2] sm:$0xf] %v24_v3  ;;  %184 = vst [vmem:[#allocation2 + $0x8] sm:$0xf] %v181_v5  ;;  %s906_s7 = smov 127   ;;  %v186_v9 = vcombine.low %v950_v2, %v950_v2  ;;  %v205_v11 = vcombine.high %v960_v4, %v960_v4  ;;  %v187_v12 = vcombine.low %v960_v4, %v960_v4  ;;  %890 = vset.pattern.permute.xlu1 %v908_v22  ;;  %vm366_vm3 = vcmask 1043456  }
   0x5   :  { %v356_v23 = vld [vmem:[%s1204_s2] sm:$0xff]  ;;  %vm94_vm4 = vcmask 842752   ;;  %vm112_vm5 = vcmask 834560   ;;  %vm58_vm6 = vcmask 1031168   ;;  %vm76_vm7 = vcmask 850944  }
   0x6   :  { %124 = vrot.lane.b32.xlu1 %v24_v3, %s900_s27  ;;  %160 = vrot.lane.b32.xlu0 %v24_v3, %s899_s24  ;;  %vm39_vm8 = vcmask 1039360   ;;  %vm362_vm9 = vcmask 293888   ;;  %vm611_vm10 = vcmask 64512  }
   0xa   :  { %142 = vrot.lane.b32.xlu1 %v20_v1, %s901_s28  ;;  %126 = vrot.lane.b32.xlu0 %v942_v0, %s900_s27 }
   0xe   :  { %122 = vrot.lane.b32.xlu1 %v20_v1, %s900_s27  ;;  %144 = vrot.lane.b32.xlu0 %v30_v6, %s901_s28 }
  0x12   :  { %88 = vrot.lane.b32.xlu1 %v24_v3, %s902_s0  ;;  %140 = vrot.lane.b32.xlu0 %v29_v7, %s901_s28 }
  0x16   :  { %106 = vrot.lane.b32.xlu1 %v20_v1, %s903_s29  ;;  %90 = vrot.lane.b32.xlu0 %v942_v0, %s902_s0 }
  0x1a   :  { %86 = vrot.lane.b32.xlu1 %v20_v1, %s902_s0  ;;  %108 = vrot.lane.b32.xlu0 %v30_v6, %s903_s29 }
  0x1e   :  { %52 = vrot.lane.b32.xlu1 %v24_v3, %s904_s30  ;;  %104 = vrot.lane.b32.xlu0 %v29_v7, %s903_s29 }
  0x22   :  { %70 = vrot.lane.b32.xlu1 %v20_v1, %s905_s6  ;;  %54 = vrot.lane.b32.xlu0 %v942_v0, %s904_s30 }
  0x26   :  { %308 = vrot.lane.b32.xlu1 %v950_v2, %s899_s24  ;;  %72 = vrot.lane.b32.xlu0 %v30_v6, %s905_s6 }
  0x2a   :  { %50 = vrot.lane.b32.xlu1 %v20_v1, %s904_s30  ;;  %310 = vrot.lane.b32.xlu0 %v181_v5, %s899_s24 }
  0x2e   :  { %164 = vrot.lane.b32.xlu1 %v49_v8, %s899_s24  ;;  %68 = vrot.lane.b32.xlu0 %v29_v7, %s905_s6 }
  0x32   :  { %35 = vrot.lane.b32.xlu1 %v30_v6, %s906_s7  ;;  %33 = vrot.lane.b32.xlu0 %v20_v1, %s906_s7 }
  0x36   :  { %276 = vrot.lane.b32.xlu1 %v181_v5, %s900_s27  ;;  %274 = vrot.lane.b32.xlu0 %v950_v2, %s900_s27 }
  0x3a   :  { %293 = vrot.lane.b32.xlu1 %v950_v2, %s901_s28  ;;  %291 = vrot.lane.b32.xlu0 %v186_v9, %s901_s28 }
  0x3e   :  { %128 = vrot.lane.b32.xlu1 %v49_v8, %s900_s27  ;;  %31 = vrot.lane.b32.xlu0 %v29_v7, %s906_s7 }
  0x42   :  { %240 = vrot.lane.b32.xlu1 %v950_v2, %s902_s0  ;;  %146 = vrot.lane.b32.xlu0 %v942_v0, %s901_s28 }
  0x46   :  { %257 = vrot.lane.b32.xlu1 %v186_v9, %s903_s29  ;;  %242 = vrot.lane.b32.xlu0 %v181_v5, %s902_s0 }
  0x4a   :  { %312 = vrot.lane.b32.xlu1 %v960_v4, %s899_s24  ;;  %259 = vrot.lane.b32.xlu0 %v950_v2, %s903_s29 }
  0x4e   :  { %92 = vrot.lane.b32.xlu1 %v49_v8, %s902_s0  ;;  %314 = vrot.lane.b32.xlu0 %v205_v11, %s899_s24 }
  0x52   :  { %206 = vrot.lane.b32.xlu1 %v950_v2, %s904_s30  ;;  %110 = vrot.lane.b32.xlu0 %v942_v0, %s903_s29 }
  0x56   :  { %223 = vrot.lane.b32.xlu1 %v186_v9, %s905_s6  ;;  %208 = vrot.lane.b32.xlu0 %v181_v5, %s904_s30 }
  0x5a   :  { %278 = vrot.lane.b32.xlu1 %v960_v4, %s900_s27  ;;  %225 = vrot.lane.b32.xlu0 %v950_v2, %s905_s6 }
  0x5e   :  { %295 = vrot.lane.b32.xlu1 %v187_v12, %s901_s28  ;;  %280 = vrot.lane.b32.xlu0 %v205_v11, %s900_s27 }
  0x62   :  { %56 = vrot.lane.b32.xlu1 %v49_v8, %s904_s30  ;;  %297 = vrot.lane.b32.xlu0 %v960_v4, %s901_s28 }
  0x66   :  { %188 = vrot.lane.b32.xlu1 %v186_v9, %s906_s7  ;;  %74 = vrot.lane.b32.xlu0 %v942_v0, %s905_s6 }
  0x6a   :  { %244 = vrot.lane.b32.xlu1 %v960_v4, %s902_s0  ;;  %190 = vrot.lane.b32.xlu0 %v950_v2, %s906_s7 }
  0x6e   :  { %261 = vrot.lane.b32.xlu1 %v187_v12, %s903_s29  ;;  %246 = vrot.lane.b32.xlu0 %v205_v11, %s902_s0 }
  0x72   :  { %37 = vrot.lane.b32.xlu1 %v942_v0, %s906_s7  ;;  %263 = vrot.lane.b32.xlu0 %v960_v4, %s903_s29 }
  0x74   :  { %v1053_v13 = vpop.permute.xlu0 %162  ;;  %v159_v14 = vpop.permute.xlu1 %158 }
  0x76   :  { %212 = vrot.lane.b32.xlu1 %v205_v11, %s904_s30  ;;  %210 = vrot.lane.b32.xlu0 %v960_v4, %s904_s30 }
  0x78   :  { %v125_v15 = vpop.permute.xlu1 %124  ;;  %v161_v16 = vpop.permute.xlu0 %160 }
  0x79   :  { %v167_v17 = vsel %vm166_vm0, %v159_v14, %v161_v16  ;;  %v168_v18 = vsel %vm166_vm0, %v161_v16, %v1053_v13 }
  0x7a   :  { %173 = vst [vmem:[#allocation2 + $0xc0] sm:$0xf] %v167_v17  ;;  %174 = vst [vmem:[#allocation2 + $0x78] sm:$0xf] %v168_v18  ;;  %229 = vrot.lane.b32.xlu1 %v960_v4, %s905_s6  ;;  %227 = vrot.lane.b32.xlu0 %v187_v12, %s905_s6 }
  0x7c   :  { %v143_v19 = vpop.permute.xlu1 %142  ;;  %v1064_v20 = vpop.permute.xlu0 %126 }
  0x7d   :  { %v132_v21 = vsel %vm130_vm1, %v125_v15, %v1064_v20 }
  0x7e   :  { %138 = vst [vmem:[#allocation2 + $0xe8] sm:$0xf] %v132_v21  ;;  %194 = vrot.lane.b32.xlu1 %v960_v4, %s906_s7  ;;  %192 = vrot.lane.b32.xlu0 %v187_v12, %s906_s7 }
  0x80   :  { %v123_v24 = vpop.permute.xlu1 %122  ;;  %v1074_v25 = vpop.permute.xlu0 %144 }
  0x81   :  { %v131_v26 = vsel %vm130_vm1, %v123_v24, %v125_v15  ;;  %v150_v27 = vsel %vm148_vm2, %v143_v19, %v1074_v25  ;;  %v351_v28 = vld [vmem:[#allocation2 + $0x78] sm:$0xf]  ;;  %v350_v29 = vld [vmem:[#allocation2 + $0xc0] sm:$0xf] }
  0x82   :  { %137 = vst [vmem:[#allocation2 + $0x28] sm:$0xf] %v131_v26  ;;  %156 = vst [vmem:[#allocation2 + $0xe8] sm:$0xf0] %v150_v27  ;;  %865 = vmatprep.subr.msk.mxu0 %vm366_vm3, %v351_v28  ;;  %359 = vperm.xlu0 %889, %v356_v23   ;;  %v1129_v23 = vld [vmem:[%s1205_s1] sm:$0xff] }
  0x83   :  { %866 = vmatpush1.msk.msra.mxu0 %vm366_vm3, %v350_v29 }
  0x84   :  { %v89_v30 = vpop.permute.xlu1 %88  ;;  %v141_v31 = vpop.permute.xlu0 %140 }
  0x85   :  { %v149_v32 = vsel %vm148_vm2, %v141_v31, %v143_v19 }
  0x86   :  { %155 = vst [vmem:[#allocation2 + $0x28] sm:$0xf0] %v149_v32 }
  0x88   :  { %v107_v33 = vpop.permute.xlu1 %106  ;;  %v1082_v34 = vpop.permute.xlu0 %90 }
  0x89   :  { %v96_v35 = vsel %vm94_vm4, %v89_v30, %v1082_v34  ;;  %v345_v36 = vld [vmem:[#allocation2 + $0xe8] sm:$0xff] }
  0x8a   :  { %102 = vst [vmem:[#allocation2 + $0x90] sm:$0xf] %v96_v35  ;;  %409 = vmatprep.subr.mxu0 %v345_v36 }
  0x8c   :  { %v87_v37 = vpop.permute.xlu1 %86  ;;  %v1086_v38 = vpop.permute.xlu0 %108 }
  0x8d   :  { %v95_v39 = vsel %vm94_vm4, %v87_v37, %v89_v30  ;;  %v114_v40 = vsel %vm112_vm5, %v107_v33, %v1086_v38  ;;  %v344_v41 = vld [vmem:[#allocation2 + $0x28] sm:$0xff] }
  0x8e   :  { %101 = vst [vmem:[#allocation2 + $0x60] sm:$0xf] %v95_v39  ;;  %120 = vst [vmem:[#allocation2 + $0x90] sm:$0xf0] %v114_v40  ;;  %410 = vmatpush1.msra.mxu0 %v344_v41 }
  0x90   :  { %v53_v42 = vpop.permute.xlu1 %52  ;;  %v105_v43 = vpop.permute.xlu0 %104 }
  0x91   :  { %v113_v44 = vsel %vm112_vm5, %v105_v43, %v107_v33 }
  0x92   :  { %119 = vst [vmem:[#allocation2 + $0x60] sm:$0xf0] %v113_v44 }
  0x94   :  { %v71_v45 = vpop.permute.xlu1 %70  ;;  %v1092_v46 = vpop.permute.xlu0 %54 }
  0x95   :  { %v60_v47 = vsel %vm58_vm6, %v53_v42, %v1092_v46  ;;  %v339_v48 = vld [vmem:[#allocation2 + $0x90] sm:$0xff] }
  0x96   :  { %66 = vst [vmem:[#allocation2 + $0x98] sm:$0xf] %v60_v47  ;;  %411 = vmatprep.subr.mxu0 %v339_v48 }
  0x98   :  { %v309_v49 = vpop.permute.xlu1 %308  ;;  %v1096_v50 = vpop.permute.xlu0 %72 }
  0x99   :  { %v78_v51 = vsel %vm76_vm7, %v71_v45, %v1096_v50  ;;  %v338_v52 = vld [vmem:[#allocation2 + $0x60] sm:$0xff] }
  0x9a   :  { %84 = vst [vmem:[#allocation2 + $0x98] sm:$0xf0] %v78_v51  ;;  %412 = vmatpush1.msra.mxu0 %v338_v52 }
  0x9c   :  { %v51_v53 = vpop.permute.xlu1 %50  ;;  %v311_v54 = vpop.permute.xlu0 %310 }
  0x9d   :  { %v59_v55 = vsel %vm58_vm6, %v51_v53, %v53_v42  ;;  %v316_v56 = vsel %vm166_vm0, %v309_v49, %v311_v54 }
  0x9e   :  { %65 = vst [vmem:[#allocation2 + $0x30] sm:$0xf] %v59_v55  ;;  %322 = vst [vmem:[#allocation2 + $0xb0] sm:$0xf] %v316_v56 }
  0xa0   :  { %v165_v57 = vpop.permute.xlu1 %164  ;;  %v69_v58 = vpop.permute.xlu0 %68 }
  0xa1   :  { %v169_v59 = vsel %vm166_vm0, %v1053_v13, %v165_v57  ;;  %v77_v60 = vsel %vm76_vm7, %v69_v58, %v71_v45  ;;  %v333_v61 = vld [vmem:[#allocation2 + $0x98] sm:$0xff] }
  0xa2   :  { %175 = vst [vmem:[#allocation2 + $0xd0] sm:$0xf] %v169_v59  ;;  %83 = vst [vmem:[#allocation2 + $0x30] sm:$0xf0] %v77_v60  ;;  %413 = vmatprep.subr.mxu0 %v333_v61 }
  0xa4   :  { %v1105_v62 = vpop.permute.xlu1 %35  ;;  %v34_v63 = vpop.permute.xlu0 %33 }
  0xa5   :  { %v41_v0 = vsel %vm39_vm8, %v34_v63, %v1105_v62  ;;  %v353_v1 = vld [vmem:[#allocation2 + $0xb0] sm:$0xf] }
  0xa6   :  { %47 = vst [vmem:[#allocation2] sm:$0xf0] %v41_v0  ;;  %868 = vmatprep.subr.msk.mxu1 %vm366_vm3, %v353_v1 }
  0xa8   :  { %v1110_v2 = vpop.permute.xlu1 %276  ;;  %v275_v3 = vpop.permute.xlu0 %274 }
  0xa9   :  { %v282_v4 = vsel %vm130_vm1, %v275_v3, %v1110_v2  ;;  %v332_v5 = vld [vmem:[#allocation2 + $0x30] sm:$0xff] }
  0xaa   :  { %v352_v6 = vld [vmem:[#allocation2 + $0xd0] sm:$0xf]  ;;  %288 = vst [vmem:[#allocation2 + $0xa0] sm:$0xf] %v282_v4  ;;  %414 = vmatpush1.msra.mxu0 %v332_v5 }
  0xab   :  { %869 = vmatpush1.msk.msra.mxu1 %vm366_vm3, %v352_v6 }
  0xac   :  { %v1115_v7 = vpop.permute.xlu1 %293  ;;  %v292_v8 = vpop.permute.xlu0 %291 }
  0xad   :  { %v299_v9 = vsel %vm148_vm2, %v292_v8, %v1115_v7  ;;  %v327_v11 = vld [vmem:[#allocation2] sm:$0xff] }
  0xae   :  { %305 = vst [vmem:[#allocation2 + $0xa0] sm:$0xf0] %v299_v9  ;;  %415 = vmatprep.subr.mxu0 %v327_v11 }
  0xb0   :  { %v129_v12 = vpop.permute.xlu1 %128  ;;  %v32_v13 = vpop.permute.xlu0 %31 }
  0xb1   :  { %v133_v14 = vsel %vm130_vm1, %v1064_v20, %v129_v12  ;;  %v40_v15 = vsel %vm39_vm8, %v32_v13, %v34_v63 }
  0xb2   :  { %139 = vst [vmem:[#allocation2 + $0x88] sm:$0xf] %v133_v14  ;;  %46 = vst [vmem:[#allocation2 + $0x80] sm:$0xf0] %v40_v15 }
  0xb4   :  { %v241_v16 = vpop.permute.xlu1 %240  ;;  %v147_v17 = vpop.permute.xlu0 %146 }
  0xb5   :  { %v151_v18 = vsel %vm148_vm2, %v1074_v25, %v147_v17  ;;  %v347_v19 = vld [vmem:[#allocation2 + $0xa0] sm:$0xff] }
  0xb6   :  { %157 = vst [vmem:[#allocation2 + $0x88] sm:$0xf0] %v151_v18  ;;  %480 = vmatprep.subr.mxu1 %v347_v19 }
  0xb8   :  { %v258_v21 = vpop.permute.xlu1 %257  ;;  %v1124_v22 = vpop.permute.xlu0 %242 }
  0xb9   :  { %v248_v20 = vsel %vm94_vm4, %v241_v16, %v1124_v22  ;;  %v326_v24 = vld [vmem:[#allocation2 + $0x80] sm:$0xff] }
  0xba   :  { %254 = vst [vmem:[#allocation2 + $0x40] sm:$0xf] %v248_v20  ;;  %416 = vmatpush1.msra.mxu0 %v326_v24 }
  0xbb   :  { %867 = vmatmul.mubr.msk.f32.vlgmr.msra.gmra.mxu0 %vm362_vm9, %v1129_v23 }
  0xbc   :  { %v313_v25 = vpop.permute.xlu1 %312  ;;  %v1135_v26 = vpop.permute.xlu0 %259  ;;  %591 = vmatprep.mubr.f32.mxu0 %v907_v10 }
  0xbd   :  { %v317_v27 = vsel %vm166_vm0, %v311_v54, %v313_v25  ;;  %v265_v28 = vsel %vm112_vm5, %v258_v21, %v1135_v26  ;;  %v346_v29 = vld [vmem:[#allocation2 + $0x88] sm:$0xff] }
  0xbe   :  { %323 = vst [vmem:[#allocation2 + $0xe0] sm:$0xf] %v317_v27  ;;  %271 = vst [vmem:[#allocation2 + $0x40] sm:$0xf0] %v265_v28  ;;  %481 = vmatpush1.msra.mxu1 %v346_v29 }
  0xc0   :  { %v93_v30 = vpop.permute.xlu1 %92  ;;  %v315_v31 = vpop.permute.xlu0 %314 }
  0xc1   :  { %v97_v32 = vsel %vm94_vm4, %v1082_v34, %v93_v30  ;;  %v318_v33 = vsel %vm166_vm0, %v313_v25, %v315_v31 }
  0xc2   :  { %103 = vst [vmem:[#allocation2 + $0x20] sm:$0xf] %v97_v32  ;;  %324 = vst [vmem:[#allocation2 + $0x38] sm:$0xf] %v318_v33  ;;  %v605_v33 = vld [vmem:[%s1206_s4] sm:$0xf] }
  0xc3   :  { %608 = vperm.xlu1 %890, %v605_v33  }
  0xc4   :  { %v207_v35 = vpop.permute.xlu1 %206  ;;  %v111_v36 = vpop.permute.xlu0 %110 }
  0xc5   :  { %v115_v37 = vsel %vm112_vm5, %v1086_v38, %v111_v36  ;;  %v341_v39 = vld [vmem:[#allocation2 + $0x40] sm:$0xff] }
  0xc6   :  { %121 = vst [vmem:[#allocation2 + $0x20] sm:$0xf0] %v115_v37  ;;  %482 = vmatprep.subr.mxu1 %v341_v39  ;;  %v354_v34 = vld [vmem:[#allocation2 + $0xe0] sm:$0xf] }
  0xc8   :  { %v224_v40 = vpop.permute.xlu1 %223  ;;  %v209_v41 = vpop.permute.xlu0 %208 }
  0xc9   :  { %v214_v42 = vsel %vm58_vm6, %v207_v35, %v209_v41  ;;  %v355_v43 = vld [vmem:[#allocation2 + $0x38] sm:$0xf] }
  0xca   :  { %220 = vst [vmem:[#allocation2 + $0xa8] sm:$0xf] %v214_v42  ;;  %871 = vmatprep.subr.msk.mxu0 %vm366_vm3, %v355_v43  ;;  %v604_v43 = vld [vmem:[%s1207_s3] sm:$0xf] }
  0xcb   :  { %872 = vmatpush1.msk.msra.mxu0 %vm366_vm3, %v354_v34 }
  0xcc   :  { %v279_v44 = vpop.permute.xlu1 %278  ;;  %v226_v45 = vpop.permute.xlu0 %225 }
  0xcd   :  { %v283_v47 = vsel %vm130_vm1, %v1110_v2, %v279_v44  ;;  %v231_v38 = vsel %vm76_vm7, %v224_v40, %v226_v45  ;;  %v340_v48 = vld [vmem:[#allocation2 + $0x20] sm:$0xff] }
  0xce   :  { %289 = vst [vmem:[#allocation2 + $0xb8] sm:$0xf] %v283_v47  ;;  %237 = vst [vmem:[#allocation2 + $0xa8] sm:$0xf0] %v231_v38  ;;  %483 = vmatpush1.msra.mxu1 %v340_v48 }
  0xd0   :  { %v296_v49 = vpop.permute.xlu1 %295  ;;  %v281_v51 = vpop.permute.xlu0 %280 }
  0xd1   :  { %v300_v52 = vsel %vm148_vm2, %v1115_v7, %v296_v49  ;;  %v284_v53 = vsel %vm130_vm1, %v279_v44, %v281_v51 }
  0xd2   :  { %306 = vst [vmem:[#allocation2 + $0xb8] sm:$0xf0] %v300_v52  ;;  %290 = vst [vmem:[#allocation2 + $0x50] sm:$0xf] %v284_v53 }
  0xd4   :  { %v57_v54 = vpop.permute.xlu1 %56  ;;  %v298_v55 = vpop.permute.xlu0 %297 }
  0xd5   :  { %v61_v56 = vsel %vm58_vm6, %v1092_v46, %v57_v54  ;;  %v301_v57 = vsel %vm148_vm2, %v296_v49, %v298_v55  ;;  %v335_v58 = vld [vmem:[#allocation2 + $0xa8] sm:$0xff] }
  0xd6   :  { %67 = vst [vmem:[#allocation2 + $0xc8] sm:$0xf] %v61_v56  ;;  %307 = vst [vmem:[#allocation2 + $0x50] sm:$0xf0] %v301_v57  ;;  %484 = vmatprep.subr.mxu1 %v335_v58 }
  0xd8   :  { %v189_v59 = vpop.permute.xlu1 %188  ;;  %v75_v60 = vpop.permute.xlu0 %74 }
  0xd9   :  { %v79_v61 = vsel %vm76_vm7, %v1096_v50, %v75_v60  ;;  %v348_v3 = vld [vmem:[#allocation2 + $0xb8] sm:$0xff] }
  0xda   :  { %85 = vst [vmem:[#allocation2 + $0xc8] sm:$0xf0] %v79_v61 }
  0xdc   :  { %v245_v63 = vpop.permute.xlu1 %244  ;;  %v191_v0 = vpop.permute.xlu0 %190 }
  0xdd   :  { %v249_v1 = vsel %vm94_vm4, %v1124_v22, %v245_v63  ;;  %v196_v2 = vsel %vm39_vm8, %v189_v59, %v191_v0  ;;  %v349_v46 = vld [vmem:[#allocation2 + $0x50] sm:$0xff] }
  0xde   :  { %255 = vst [vmem:[#allocation2 + $0x48] sm:$0xf] %v249_v1  ;;  %202 = vst [vmem:[#allocation2 + $0x70] sm:$0xf0] %v196_v2  ;;  %551 = vmatprep.subr.mxu0 %v349_v46 }
  0xdf   :  { %552 = vmatpush1.msra.mxu0 %v348_v3 }
  0xe0   :  { %v262_v4 = vpop.permute.xlu1 %261  ;;  %v247_v5 = vpop.permute.xlu0 %246 }
  0xe1   :  { %v266_v6 = vsel %vm112_vm5, %v1135_v26, %v262_v4  ;;  %v250_v50 = vsel %vm94_vm4, %v245_v63, %v247_v5  ;;  %v334_v7 = vld [vmem:[#allocation2 + $0xc8] sm:$0xff]  ;;  %v834_v63 = vld [vmem:[#allocation2 + $0x60] sm:$0xf] }
  0xe2   :  { %272 = vst [vmem:[#allocation2 + $0x48] sm:$0xf0] %v266_v6  ;;  %256 = vst [vmem:[#allocation2 + $0x58] sm:$0xf] %v250_v50  ;;  %485 = vmatpush1.msra.mxu1 %v334_v7  ;;  %v836_v5 = vld [vmem:[#allocation2 + $0x20] sm:$0xf] }
  0xe4   :  { %v38_v8 = vpop.permute.xlu1 %37  ;;  %v264_v9 = vpop.permute.xlu0 %263 }
  0xe5   :  { %v42_v11 = vsel %vm39_vm8, %v1105_v62, %v38_v8  ;;  %v267_v12 = vsel %vm112_vm5, %v262_v4, %v264_v9  ;;  %v329_v13 = vld [vmem:[#allocation2 + $0x70] sm:$0xff] }
  0xe6   :  { %48 = vst [vmem:[#allocation2 + $0xd8] sm:$0xf0] %v42_v11  ;;  %273 = vst [vmem:[#allocation2 + $0x58] sm:$0xf0] %v267_v12  ;;  %486 = vmatprep.subr.mxu1 %v329_v13 }
  0xe8   :  { %v213_v14 = vpop.permute.xlu1 %212  ;;  %v211_v15 = vpop.permute.xlu0 %210 }
  0xe9   :  { %v215_v16 = vsel %vm58_vm6, %v209_v41, %v211_v15  ;;  %v216_v17 = vsel %vm58_vm6, %v211_v15, %v213_v14  ;;  %v342_v24 = vld [vmem:[#allocation2 + $0x48] sm:$0xff]  ;;  %v837_v15 = vld [vmem:[#allocation2 + $0x40] sm:$0xf] }
  0xea   :  { %221 = vst [vmem:[#allocation2 + $0x10] sm:$0xf] %v215_v16  ;;  %222 = vst [vmem:[#allocation2 + $0x68] sm:$0xf] %v216_v17  ;;  %v838_v16 = vld [vmem:[#allocation2 + $0x48] sm:$0xf] }
  0xec   :  { %v230_v18 = vpop.permute.xlu1 %229  ;;  %v228_v19 = vpop.permute.xlu0 %227 }
  0xed   :  { %v232_v21 = vsel %vm76_vm7, %v226_v45, %v228_v19  ;;  %v233_v62 = vsel %vm76_vm7, %v228_v19, %v230_v18  ;;  %v328_v22 = vld [vmem:[#allocation2 + $0xd8] sm:$0xff] }
  0xee   :  { %v343_v20 = vld [vmem:[#allocation2 + $0x58] sm:$0xff]  ;;  %238 = vst [vmem:[#allocation2 + $0x10] sm:$0xf0] %v232_v21  ;;  %239 = vst [vmem:[#allocation2 + $0x68] sm:$0xf0] %v233_v62  ;;  %487 = vmatpush1.msra.mxu1 %v328_v22 }
  0xef   :  { %553 = vmatprep.subr.mxu0 %v343_v20  ;;  %870 = vmatmul.mubr.msk.f32.vlgmr.msra.gmra.mxu1 %vm362_vm9, %v1129_v23  ;;  %v839_v21 = vld [vmem:[#allocation2 + $0x58] sm:$0xf] }
  0xf0   :  { %554 = vmatpush1.msra.mxu0 %v342_v24  ;;  %v195_v25 = vpop.permute.xlu1 %194  ;;  %v193_v26 = vpop.permute.xlu0 %192  ;;  %679 = vmatprep.mubr.f32.mxu1 %v907_v10 }
  0xf1   :  { %v197_v27 = vsel %vm39_vm8, %v191_v0, %v193_v26  ;;  %v198_v28 = vsel %vm39_vm8, %v193_v26, %v195_v25  ;;  %v835_v0 = vld [vmem:[#allocation2 + $0x90] sm:$0xf] }
  0xf2   :  { %203 = vst [vmem:[#allocation2 + $0x8] sm:$0xf0] %v197_v27  ;;  %204 = vst [vmem:[#allocation2 + $0x18] sm:$0xf0] %v198_v28 }
  0xf5   :  { %v337_v29 = vld [vmem:[#allocation2 + $0x68] sm:$0xff]  ;;  %v336_v30 = vld [vmem:[#allocation2 + $0x10] sm:$0xff] }
  0xf6   :  { %555 = vmatprep.subr.mxu0 %v337_v29 }
  0xf7   :  { %556 = vmatpush1.msra.mxu0 %v336_v30 }
  0xf9   :  { %v331_v31 = vld [vmem:[#allocation2 + $0x18] sm:$0xff]  ;;  %v330_v32 = vld [vmem:[#allocation2 + $0x8] sm:$0xff] }
  0xfa   :  { %557 = vmatprep.subr.mxu0 %v331_v31 }
  0xfb   :  { %558 = vmatpush1.msra.mxu0 %v330_v32 }
  0xfc   :  { %873 = vmatmul.mubr.msk.f32.vlgmr.msra.gmra.mxu0 %vm362_vm9, %v1129_v23 }
  0xfd   :  { %v360_v35 = vpop.permute.xlu0 %359 }
 0x13e   :  { %v609_v55 = vpop.permute.xlu1 %608 }
 0x17b   :  { %v451_v36 = vpop.f32.mrf.mxu0 }
 0x17c   :  { %v452_v37 = vadd.f32 %v451_v36, %v360_v35 }
 0x17d   :  { %v453_v39 = vpop.f32.mrf.mxu0 }
 0x17e   :  { %v454_v40 = vadd.f32 %v453_v39, %v360_v35  ;;  %v598_v41 = vmax.f32 %v452_v37, 0.0 }
 0x180   :  { %v599_v42 = vmax.f32 %v454_v40, 0.0 }
 0x182   :  { %645 = vmatprep.subr.mxu1 %v599_v42 }
 0x183   :  { %646 = vmatpush1.msra.mxu1 %v598_v41 }
 0x184   :  { %874 = vmatmul.mubr.msk.f32.vlgmr.msra.gmra.mxu1 %vm611_vm10, %v604_v43 }
 0x185   :  { %750 = vmatprep.mubr.f32.mxu1 %v907_v10 }
 0x1af   :  { %v522_v23 = vpop.f32.mrf.mxu1 }
 0x1b0   :  { %v523_v34 = vadd.f32 %v522_v23, %v360_v35 }
 0x1b1   :  { %v524_v44 = vpop.f32.mrf.mxu1 }
 0x1b2   :  { %v525_v45 = vadd.f32 %v524_v44, %v360_v35  ;;  %v600_v47 = vmax.f32 %v523_v34, 0.0 }
 0x1b4   :  { %v601_v38 = vmax.f32 %v525_v45, 0.0 }
 0x1b6   :  { %716 = vmatprep.subr.mxu1 %v601_v38 }
 0x1b7   :  { %717 = vmatpush1.msra.mxu1 %v600_v47 }
 0x1b8   :  { %875 = vmatmul.mubr.msk.f32.vlgmr.msra.gmra.mxu1 %vm611_vm10, %v604_v43 }
 0x1b9   :  { %821 = vmatprep.mubr.f32.mxu1 %v907_v10 }
 0x1bc   :  { %v593_v48 = vpop.f32.mrf.mxu0 }
 0x1bd   :  { %v594_v49 = vadd.f32 %v593_v48, %v360_v35 }
 0x1be   :  { %v595_v51 = vpop.f32.mrf.mxu0 }
 0x1bf   :  { %v596_v52 = vadd.f32 %v595_v51, %v360_v35  ;;  %v602_v54 = vmax.f32 %v594_v49, 0.0 }
 0x1c1   :  { %v603_v53 = vmax.f32 %v596_v52, 0.0 }
 0x1c3   :  { %787 = vmatprep.subr.mxu1 %v603_v53 }
 0x1c4   :  { %788 = vmatpush1.msra.mxu1 %v602_v54 }
 0x1c5   :  { %876 = vmatmul.mubr.msk.f32.vlgmr.msra.gmra.mxu1 %vm611_vm10, %v604_v43 }
 0x244   :  { %v681_v56 = vpop.f32.mrf.mxu1 }
 0x245   :  { %v682_v57 = vadd.f32 %v681_v56, %v609_v55 }
 0x246   :  { %v683_v58 = vpop.f32.mrf.mxu1 }
 0x247   :  { %v828_v59 = vmax.f32 %v682_v57, 0.0  ;;  %v684_v60 = vadd.f32 %v683_v58, %v609_v55 }
 0x249   :  { %v829_v61 = vmax.f32 %v684_v60, 0.0  ;;  %v840_v10 = vadd.f32 %v834_v63, %v828_v59 }
 0x24b   :  { %v841_v1 = vadd.f32 %v835_v0, %v829_v61 }
 0x24d   :  { %v848_v2 = vcombine.low %v840_v10, %v841_v1 }
 0x24f   :  { %850 = vst [vmem:[%s1208_s5] sm:$0xff] %v848_v2 }
 0x278   :  { %v752_v46 = vpop.f32.mrf.mxu1 }
 0x279   :  { %v753_v3 = vadd.f32 %v752_v46, %v609_v55 }
 0x27a   :  { %v754_v50 = vpop.f32.mrf.mxu1 }
 0x27b   :  { %v830_v4 = vmax.f32 %v753_v3, 0.0  ;;  %v755_v7 = vadd.f32 %v754_v50, %v609_v55 }
 0x27d   :  { %v842_v6 = vadd.f32 %v836_v5, %v830_v4  ;;  %v831_v9 = vmax.f32 %v755_v7, 0.0 }
 0x27f   :  { %851 = vst [vmem:[%s1208_s5 + $0x8] sm:$0xf] %v842_v6  ;;  %v843_v17 = vadd.f32 %v837_v15, %v831_v9 }
 0x285   :  { %v823_v8 = vpop.f32.mrf.mxu1 }
 0x286   :  { %v824_v11 = vadd.f32 %v823_v8, %v609_v55 }
 0x287   :  { %v825_v12 = vpop.f32.mrf.mxu1 }
 0x288   :  { %v832_v13 = vmax.f32 %v824_v11, 0.0  ;;  %v826_v14 = vadd.f32 %v825_v12, %v609_v55 }
 0x28a   :  { %v844_v18 = vadd.f32 %v838_v16, %v832_v13  ;;  %v833_v19 = vmax.f32 %v826_v14, 0.0 }
 0x28c   :  { %v854_v62 = vcombine.low %v843_v17, %v844_v18  ;;  %v845_v22 = vadd.f32 %v839_v21, %v833_v19 }
 0x28e   :  { %877 = vst [vmem:[%s1208_s5 + $0xc] sm:$0xff] %v854_v62  ;;  %878 = vst [vmem:[%s1208_s5 + $0x14] sm:$0xf] %v845_v22 }

</bundles_post_ra>
